<compile_context>
chip_gen: v5e
topology: v5e:2x2
jax: 0.10.0
libtpu: 0.0.40
codegen_flags: <defaults>
</compile_context>

<pallas_src>
import math

import jax
import jax.numpy as jnp
from jax.experimental import pallas as pl
from jax.experimental.pallas import tpu as pltpu


# ----------------------------- Pallas kernels ------------------------------

def _linear_kernel(x_ref, w_ref, b_ref, o_ref):
    # x: (TM, Cin), w: (Cin, Cout), b: (1, Cout) -> o: (TM, Cout)
    acc = jnp.dot(x_ref[...], w_ref[...], preferred_element_type=jnp.float32)
    o_ref[...] = (acc + b_ref[...]).astype(o_ref.dtype)


def _round_up(x, m):
    return (x + m - 1) // m * m


def _round_down(x, m):
    return (x // m) * m


_VMEM_LIMIT = None


def _vmem_limit_bytes():
    """<= 48 MiB on v7x (64 MiB physical VMEM), up to 64 MiB on the 128 MiB
    parts (v5e/v6e), leaving double-buffering headroom for big row tiles."""
    global _VMEM_LIMIT
    if _VMEM_LIMIT is None:
        try:
            cap = int(pltpu.get_tpu_info().vmem_capacity_bytes)
        except Exception:
            cap = 64 * 1024 * 1024
        _VMEM_LIMIT = int(min(64 * 1024 * 1024, (cap * 3) // 4))
    return _VMEM_LIMIT


def _choose_tm(m, bytes_per_row, *, target_step_bytes=2 << 20, tm_cap=4096,
               min_blocks=2):
    """Row tile, always a multiple of 16 (valid for bf16 and f32 blocks):
      * large enough that one grid step moves >= ~2 MB of HBM traffic
        (amortizes the ~0.35us fixed per-step overhead; narrow-channel linears
        get tiles of 2048-4096 rows),
      * small enough that the 'parallel' grid axis keeps >= min_blocks blocks
        so both of v7x's TensorCores get work (v5e/v6e have 1 TC; harmless),
      * never larger than the row count; the ragged tail (grid = pl.cdiv) is
        handled by Pallas' masked writeback -> no jnp.pad / out[:m] passes."""
    tm = max(128, target_step_bytes // max(1, bytes_per_row))
    tm = min(tm, tm_cap)
    tm = min(tm, _round_up(pl.cdiv(m, min_blocks), 16))
    tm = max(16, _round_down(tm, 16))
    tm = min(tm, max(16, _round_down(m, 16)))
    return int(tm)


def pallas_linear(x, w, b, *, out_dtype=None, target_step_bytes=2 << 20,
                  tm_cap=4096):
    """y = x @ w + b over the trailing axis; x: [..., Cin] -> [..., Cout].

    Large (tm, Cin) row tiles feed the MXU; the weight/bias block index is
    constant over the grid so Pallas keeps them resident in VMEM.  Weights are
    cast to the activation dtype (bf16 or f32); accumulation is always f32.
    Remainder rows are handled by a ragged last block (grid = pl.cdiv), not by
    padding/slicing passes."""
    cin, cout = w.shape
    lead = x.shape[:-1]
    m = int(math.prod(lead))
    x2 = x.reshape(m, cin)
    if w.dtype != x2.dtype:
        w = w.astype(x2.dtype)          # tiny trace-time cast, no activation copy
    b2 = b.reshape(1, cout)
    if out_dtype is None:
        out_dtype = x2.dtype

    m_eff = m
    if m < 16:                          # never hit at realistic sizes
        x2 = jnp.pad(x2, ((0, 16 - m), (0, 0)))
        m_eff = 16

    bytes_per_row = (cin + cout) * jnp.dtype(x2.dtype).itemsize
    tm = _choose_tm(m_eff, bytes_per_row,
                    target_step_bytes=target_step_bytes, tm_cap=tm_cap)
    grid = pl.cdiv(m_eff, tm)

    out = pl.pallas_call(
        _linear_kernel,
        out_shape=jax.ShapeDtypeStruct((m_eff, cout), out_dtype),
        grid_spec=pltpu.PrefetchScalarGridSpec(
            num_scalar_prefetch=0,
            grid=(grid,),
            in_specs=[
                pl.BlockSpec((tm, cin), lambda i: (i, 0)),
                pl.BlockSpec((cin, cout), lambda i: (0, 0)),
                pl.BlockSpec((1, cout), lambda i: (0, 0)),
            ],
            out_specs=pl.BlockSpec((tm, cout), lambda i: (i, 0)),
        ),
        compiler_params=pltpu.CompilerParams(
            dimension_semantics=("parallel",),
            vmem_limit_bytes=_vmem_limit_bytes(),
        ),
    )(x2, w, b2)
    if m_eff != m:
        out = out[:m]
    return out.reshape(*lead, cout)


def pallas_linear_lane_padded(x, w, b, *, keep_padded=False, **kw):
    """Same as pallas_linear, but zero-pads Cout up to a multiple of 128 lanes
    so the kernel issues unmasked, lane-dense stores (to_msa Cout=21,
    template_proj Cout=64).  Padding the weight/bias is a tiny trace-time op;
    the logical Cout is sliced back off unless keep_padded=True."""
    cin, cout = w.shape
    cpad = _round_up(max(cout, 128), 128)
    if cpad != cout:
        w = jnp.pad(w, ((0, 0), (0, cpad - cout)))
        b = jnp.pad(b, ((0, cpad - cout),))
    y = pallas_linear(x, w, b, **kw)
    if keep_padded or cpad == cout:
        return y
    # TODO(synk): at production sizes, defer this slice to the consumer to
    # save one HBM pass (matters most on v5e).
    return y[..., :cout]


def pallas_pair_heads(rr_edge, wp, bp, wd, bd):
    """Fused OutputLayer pair heads: to_ptm + to_dist in one pallas_call.

    rr_edge is read from HBM exactly once; a single lane-dense (Cz, 128)
    matmul produces [ptm | 0.5*z_d] per row tile, with symmetry()'s 0.5 folded
    into Wd/bd at trace time.  Because Linear is affine and the bias is i<->j
    symmetric,
        to_dist(symmetry(rr)) = zd_half + zd_half^T,
        zd_half = rr @ (0.5*Wd) + 0.5*bd,
    so symmetrization touches only the narrow 64-channel intermediate (kept in
    the compute dtype, e.g. bf16) instead of the Cz-channel rr_edge."""
    dt = rr_edge.dtype
    wc = jnp.concatenate([wp, 0.5 * wd], axis=1).astype(dt)   # (Cz, 128)
    bc = jnp.concatenate([bp, 0.5 * bd], axis=0)              # (128,), f32
    z = pallas_linear(rr_edge, wc, bc)                        # [B, L, L, 128]
    ptm = z[..., :64]
    zd = z[..., 64:]
    # TODO(synk): the remaining slice + transposed add could become a second
    # Pallas kernel over square residue tiles with mirrored index_maps on z,
    # but Mosaic's lowering of the required leading-dims tile transpose is not
    # reliable; the 64-channel, compute-dtype epilogue is left to XLA.
    distance = zd + jnp.swapaxes(zd, 1, 2)
    return distance, ptm


# ----------------------------- parameter setup -----------------------------

def _linear_params(key, cin, cout, zero_weight=False):
    kw, kb = jax.random.split(key)
    bound = 1.0 / (cin ** 0.5)
    if zero_weight:
        w = jnp.zeros((cin, cout), jnp.float32)     # nn.init.constant_(w, 0)
    else:
        w = jax.random.uniform(kw, (cin, cout), jnp.float32, -bound, bound)
    b = jax.random.uniform(kb, (cout,), jnp.float32, -bound, bound)
    return w, b


def init_trfold_params(key, MSA_channels, pair_channels):
    ks = jax.random.split(key, 6)
    return {
        "template_proj": _linear_params(ks[0], 82, 64),
        "to_dist": _linear_params(ks[1], pair_channels, 64, zero_weight=True),
        "to_msa": _linear_params(ks[2], MSA_channels, 21, zero_weight=True),
        "to_ptm": _linear_params(ks[3], pair_channels, 64, zero_weight=True),
        "proj_node": _linear_params(ks[4], MSA_channels, 384),
        "extra_msa_embedding": jax.random.normal(ks[5], (21, 64), jnp.float32),
    }


# ------------------------------- forward -----------------------------------

def trfold_forward(params, msa_matrix, extra_msa, template, rr_edge, bf16=True):
    # The module's bf16 flag is used as the mixed-precision compute dtype of
    # the Pallas linears (activations + weights bf16, f32 accumulation, f32
    # final outputs).  Every kernel here is HBM-bandwidth bound, so this is
    # ~2x on the mem-bound roofline, most valuable on v5e.
    cdt = jnp.bfloat16 if bf16 else jnp.float32
    msa_c = msa_matrix.astype(cdt)
    rr_c = rr_edge.astype(cdt)
    tmpl_c = template.astype(cdt)

    # template projection (82 -> 64), lane-padded to 128 so the writeback of
    # the largest tensor (B*T*L*L rows) uses unmasked lane-dense stores.
    # Cin stays 82: no Cin padding (memory-bound; extra HBM bytes, zero gain).
    template_feat = pallas_linear_lane_padded(tmpl_c, *params["template_proj"])

    # TODO(synk): Template_Embedding + TR_embedding undefined in the source;
    # rr_edge is supplied as an already-embedded pair feature; template_feat
    # is returned below so the template_proj kernel is not dead code.

    # extra-MSA token embedding (nn.Embedding lookup; pure gather glue).
    extra = jnp.take(params["extra_msa_embedding"], extra_msa, axis=0)
    # TODO(synk): extra_blocks / af2blocks (TR_block: MSA_Attn, Pair2PairBlock,
    # Update_Edge) are undefined in the source -> identity here.
    del extra

    # OutputLayer: to_msa with lane-padded (21 -> 128) stores; to_ptm + to_dist
    # fused into a single pass over rr_edge with the 0.5 folded into Wd/bd.
    msa_out = pallas_linear_lane_padded(msa_c, *params["to_msa"])        # [B,S,L,21]
    distance, ptm = pallas_pair_heads(
        rr_c, *params["to_ptm"], *params["to_dist"])                     # [B,L,L,64]

    # node = proj_node(msa_matrix[:, 0])   (Cout = 384 = 3*128, lane-dense)
    node = pallas_linear(msa_c[:, 0, :, :], *params["proj_node"])        # [B,L,384]

    # TODO(synk): StructureModule / coord2bindist / recycle_dist undefined;
    # structure-dependent outputs omitted.
    return {
        "distance": distance.astype(jnp.float32),
        "msa": msa_out.astype(jnp.float32),
        "ptm": ptm.astype(jnp.float32),
        "node": node,
        "template_feat": template_feat,
        "recycle_query": msa_matrix[:, 0, :, :],
        "recycle_rr": rr_edge,
    }


# --------------------------------- main -------------------------------------

if __name__ == "__main__":
    B, S, Se, L, T = 2, 4, 4, 16, 2
    Cm, Cz = 32, 32   # MSA_channels, pair_channels (small synthetic config)

    key = jax.random.PRNGKey(0)
    k_par, k_msa, k_rr, k_tmpl, k_extra, k_hd = jax.random.split(key, 6)

    params = init_trfold_params(k_par, Cm, Cz)

    msa_matrix = jax.random.normal(k_msa, (B, S, L, Cm), jnp.float32)
    rr_edge = jax.random.normal(k_rr, (B, L, L, Cz), jnp.float32)
    template = jax.random.normal(k_tmpl, (B, T, L, L, 82), jnp.float32)
    extra_msa = jax.random.randint(k_extra, (B, Se, L), 0, 21, jnp.int32)

    fwd = jax.jit(trfold_forward, static_argnames=("bf16",))
    out = fwd(params, msa_matrix, extra_msa, template, rr_edge, bf16=True)
    out = jax.block_until_ready(out)

    assert out["distance"].shape == (B, L, L, 64)
    assert out["msa"].shape == (B, S, L, 21)
    assert out["ptm"].shape == (B, L, L, 64)
    assert out["node"].shape == (B, L, 384)
    assert out["template_feat"].shape == (B, T, L, L, 64)

    # ---------------- references ----------------
    def ref_linear(x, w, b):
        return jnp.matmul(x.astype(jnp.float32), w.astype(jnp.float32),
                          precision=jax.lax.Precision.HIGHEST) + b

    wp, bp = params["to_ptm"]
    wd, bd = params["to_dist"]
    wm, bm = params["to_msa"]
    wn, bn = params["proj_node"]
    wt, bt_ = params["template_proj"]

    TOL_BF16 = 5e-2
    TOL_F32 = 3e-2
    bt = jnp.bfloat16

    # bf16 forward vs references on the same bf16-cast inputs/weights
    msa_b = msa_matrix.astype(bt)
    rr_b32 = rr_edge.astype(bt).astype(jnp.float32)
    sym_b = 0.5 * (rr_b32 + jnp.swapaxes(rr_b32, 1, 2))
    assert jnp.allclose(out["ptm"],
                        ref_linear(rr_edge.astype(bt), wp.astype(bt), bp),
                        atol=TOL_BF16)
    assert jnp.allclose(out["distance"],
                        ref_linear(sym_b, wd.astype(bt), bd), atol=TOL_BF16)
    assert jnp.allclose(out["msa"],
                        ref_linear(msa_b, wm.astype(bt), bm), atol=TOL_BF16)
    assert jnp.allclose(out["node"].astype(jnp.float32),
                        ref_linear(msa_b[:, 0], wn.astype(bt), bn),
                        atol=TOL_BF16)
    assert jnp.allclose(out["template_feat"].astype(jnp.float32),
                        ref_linear(template.astype(bt), wt.astype(bt), bt_),
                        atol=TOL_BF16)

    # f32 direct checks with NON-zero weights (validates the matmul/fusion
    # path, not just the bias broadcast).
    tf = pallas_linear_lane_padded(template, wt, bt_)
    assert jnp.allclose(tf, ref_linear(template, wt, bt_), atol=TOL_F32)

    kk = jax.random.split(k_hd, 5)
    wp_r = jax.random.normal(kk[0], (Cz, 64), jnp.float32) * 0.05
    bp_r = jax.random.normal(kk[1], (64,), jnp.float32) * 0.05
    wd_r = jax.random.normal(kk[2], (Cz, 64), jnp.float32) * 0.05
    bd_r = jax.random.normal(kk[3], (64,), jnp.float32) * 0.05
    dist_r, ptm_r = pallas_pair_heads(rr_edge, wp_r, bp_r, wd_r, bd_r)
    sym = 0.5 * (rr_edge + jnp.swapaxes(rr_edge, 1, 2))
    assert jnp.allclose(ptm_r, ref_linear(rr_edge, wp_r, bp_r), atol=TOL_F32)
    assert jnp.allclose(dist_r, ref_linear(sym, wd_r, bd_r), atol=TOL_F32)

    # ragged row count (exercises the pl.cdiv partial last block)
    xr = jax.random.normal(kk[4], (200, Cm), jnp.float32)
    yr = pallas_linear(xr, wn, bn)
    assert jnp.allclose(yr, ref_linear(xr, wn, bn), atol=TOL_F32)

    print("KERNEL_OK")
</pallas_src>

<mosaic_0001>
module attributes {stable_mosaic.version = 11 : i64} {
  func.func @_linear_kernel(%arg0: i32, %arg1: memref<256x32xbf16, #tpu.memory_space<vmem>>, %arg2: memref<32x128xbf16, #tpu.memory_space<vmem>>, %arg3: memref<1x128xf32, #tpu.memory_space<vmem>>, %arg4: memref<256x128xbf16, #tpu.memory_space<vmem>>) attributes {dimension_semantics = [#tpu.dimension_semantics<parallel>], iteration_bounds = array<i64: 2>, scalar_prefetch = 0 : i64, scratch_operands = 0 : i64, tpu.core_type = #tpu.core_type<tc>, window_params = [{transform_indices = @transform_0, window_bounds = array<i64: 256, 32>}, {pipeline_mode = #tpu.pipeline_mode<synchronous>, transform_indices = @transform_1, window_bounds = array<i64: 32, 128>}, {pipeline_mode = #tpu.pipeline_mode<synchronous>, transform_indices = @transform_2, window_bounds = array<i64: 1, 128>}, {transform_indices = @transform_3, window_bounds = array<i64: 256, 128>}]} {
    %c0 = arith.constant 0 : index
    %c0_0 = arith.constant 0 : index
    %0 = vector.load %arg1[%c0, %c0_0] : memref<256x32xbf16, #tpu.memory_space<vmem>>, vector<256x32xbf16>
    %c0_1 = arith.constant 0 : index
    %c0_2 = arith.constant 0 : index
    %1 = vector.load %arg2[%c0_1, %c0_2] : memref<32x128xbf16, #tpu.memory_space<vmem>>, vector<32x128xbf16>
    %cst = arith.constant dense<0.000000e+00> : vector<256x128xf32>
    %2 = tpu.matmul %0, %1, %cst {dimension_numbers = #tpu.dot_dimension_numbers<[1], [0], [0], [1], [0, 0, 1, 1], [], []>} : vector<256x32xbf16>, vector<32x128xbf16>, vector<256x128xf32> -> vector<256x128xf32>
    %c0_3 = arith.constant 0 : index
    %c0_4 = arith.constant 0 : index
    %3 = vector.load %arg3[%c0_3, %c0_4] : memref<1x128xf32, #tpu.memory_space<vmem>>, vector<1x128xf32>
    %4 = vector.broadcast %3 : vector<1x128xf32> to vector<256x128xf32>
    %5 = arith.addf %2, %4 : vector<256x128xf32>
    %6 = arith.truncf %5 : vector<256x128xf32> to vector<256x128xbf16>
    %c0_5 = arith.constant 0 : index
    %c0_6 = arith.constant 0 : index
    %7 = vector.load %arg4[%c0_5, %c0_6] : memref<256x128xbf16, #tpu.memory_space<vmem>>, vector<256x128xbf16>
    tpu.vector_store %arg4[%c0_5, %c0_6], %6 {strides = array<i32>} : memref<256x128xbf16, #tpu.memory_space<vmem>>, vector<256x128xbf16>,
    return
  }
  func.func @transform_0(%arg0: i32) -> (i32, i32) {
    %c0_i32 = arith.constant 0 : i32
    %c0_i32_0 = arith.constant 0 : i32
    return %arg0, %c0_i32 : i32, i32
  }
  func.func @transform_1(%arg0: i32) -> (i32, i32) {
    %c0_i32 = arith.constant 0 : i32
    %c0_i32_0 = arith.constant 0 : i32
    %c0_i32_1 = arith.constant 0 : i32
    return %c0_i32, %c0_i32_0 : i32, i32
  }
  func.func @transform_2(%arg0: i32) -> (i32, i32) {
    %c0_i32 = arith.constant 0 : i32
    %c0_i32_0 = arith.constant 0 : i32
    %c0_i32_1 = arith.constant 0 : i32
    return %c0_i32, %c0_i32_0 : i32, i32
  }
  func.func @transform_3(%arg0: i32) -> (i32, i32) {
    %c0_i32 = arith.constant 0 : i32
    %c0_i32_0 = arith.constant 0 : i32
    return %arg0, %c0_i32 : i32, i32
  }
}

module attributes {stable_mosaic.version = 11 : i64} {
  func.func @_linear_kernel(%arg0: i32, %arg1: memref<64x32xbf16, #tpu.memory_space<vmem>>, %arg2: memref<32x128xbf16, #tpu.memory_space<vmem>>, %arg3: memref<1x128xf32, #tpu.memory_space<vmem>>, %arg4: memref<64x128xbf16, #tpu.memory_space<vmem>>) attributes {dimension_semantics = [#tpu.dimension_semantics<parallel>], iteration_bounds = array<i64: 2>, scalar_prefetch = 0 : i64, scratch_operands = 0 : i64, tpu.core_type = #tpu.core_type<tc>, window_params = [{transform_indices = @transform_0, window_bounds = array<i64: 64, 32>}, {pipeline_mode = #tpu.pipeline_mode<synchronous>, transform_indices = @transform_1, window_bounds = array<i64: 32, 128>}, {pipeline_mode = #tpu.pipeline_mode<synchronous>, transform_indices = @transform_2, window_bounds = array<i64: 1, 128>}, {transform_indices = @transform_3, window_bounds = array<i64: 64, 128>}]} {
    %c0 = arith.constant 0 : index
    %c0_0 = arith.constant 0 : index
    %0 = vector.load %arg1[%c0, %c0_0] : memref<64x32xbf16, #tpu.memory_space<vmem>>, vector<64x32xbf16>
    %c0_1 = arith.constant 0 : index
    %c0_2 = arith.constant 0 : index
    %1 = vector.load %arg2[%c0_1, %c0_2] : memref<32x128xbf16, #tpu.memory_space<vmem>>, vector<32x128xbf16>
    %cst = arith.constant dense<0.000000e+00> : vector<64x128xf32>
    %2 = tpu.matmul %0, %1, %cst {dimension_numbers = #tpu.dot_dimension_numbers<[1], [0], [0], [1], [0, 0, 1, 1], [], []>} : vector<64x32xbf16>, vector<32x128xbf16>, vector<64x128xf32> -> vector<64x128xf32>
    %c0_3 = arith.constant 0 : index
    %c0_4 = arith.constant 0 : index
    %3 = vector.load %arg3[%c0_3, %c0_4] : memref<1x128xf32, #tpu.memory_space<vmem>>, vector<1x128xf32>
    %4 = vector.broadcast %3 : vector<1x128xf32> to vector<64x128xf32>
    %5 = arith.addf %2, %4 : vector<64x128xf32>
    %6 = arith.truncf %5 : vector<64x128xf32> to vector<64x128xbf16>
    %c0_5 = arith.constant 0 : index
    %c0_6 = arith.constant 0 : index
    %7 = vector.load %arg4[%c0_5, %c0_6] : memref<64x128xbf16, #tpu.memory_space<vmem>>, vector<64x128xbf16>
    tpu.vector_store %arg4[%c0_5, %c0_6], %6 {strides = array<i32>} : memref<64x128xbf16, #tpu.memory_space<vmem>>, vector<64x128xbf16>,
    return
  }
  func.func @transform_0(%arg0: i32) -> (i32, i32) {
    %c0_i32 = arith.constant 0 : i32
    %c0_i32_0 = arith.constant 0 : i32
    return %arg0, %c0_i32 : i32, i32
  }
  func.func @transform_1(%arg0: i32) -> (i32, i32) {
    %c0_i32 = arith.constant 0 : i32
    %c0_i32_0 = arith.constant 0 : i32
    %c0_i32_1 = arith.constant 0 : i32
    return %c0_i32, %c0_i32_0 : i32, i32
  }
  func.func @transform_2(%arg0: i32) -> (i32, i32) {
    %c0_i32 = arith.constant 0 : i32
    %c0_i32_0 = arith.constant 0 : i32
    %c0_i32_1 = arith.constant 0 : i32
    return %c0_i32, %c0_i32_0 : i32, i32
  }
  func.func @transform_3(%arg0: i32) -> (i32, i32) {
    %c0_i32 = arith.constant 0 : i32
    %c0_i32_0 = arith.constant 0 : i32
    return %arg0, %c0_i32 : i32, i32
  }
}

module attributes {stable_mosaic.version = 11 : i64} {
  func.func @_linear_kernel(%arg0: i32, %arg1: memref<16x32xbf16, #tpu.memory_space<vmem>>, %arg2: memref<32x384xbf16, #tpu.memory_space<vmem>>, %arg3: memref<1x384xf32, #tpu.memory_space<vmem>>, %arg4: memref<16x384xbf16, #tpu.memory_space<vmem>>) attributes {dimension_semantics = [#tpu.dimension_semantics<parallel>], iteration_bounds = array<i64: 2>, scalar_prefetch = 0 : i64, scratch_operands = 0 : i64, tpu.core_type = #tpu.core_type<tc>, window_params = [{transform_indices = @transform_0, window_bounds = array<i64: 16, 32>}, {pipeline_mode = #tpu.pipeline_mode<synchronous>, transform_indices = @transform_1, window_bounds = array<i64: 32, 384>}, {pipeline_mode = #tpu.pipeline_mode<synchronous>, transform_indices = @transform_2, window_bounds = array<i64: 1, 384>}, {transform_indices = @transform_3, window_bounds = array<i64: 16, 384>}]} {
    %c0 = arith.constant 0 : index
    %c0_0 = arith.constant 0 : index
    %0 = vector.load %arg1[%c0, %c0_0] : memref<16x32xbf16, #tpu.memory_space<vmem>>, vector<16x32xbf16>
    %c0_1 = arith.constant 0 : index
    %c0_2 = arith.constant 0 : index
    %1 = vector.load %arg2[%c0_1, %c0_2] : memref<32x384xbf16, #tpu.memory_space<vmem>>, vector<32x384xbf16>
    %cst = arith.constant dense<0.000000e+00> : vector<16x384xf32>
    %2 = tpu.matmul %0, %1, %cst {dimension_numbers = #tpu.dot_dimension_numbers<[1], [0], [0], [1], [0, 0, 1, 1], [], []>} : vector<16x32xbf16>, vector<32x384xbf16>, vector<16x384xf32> -> vector<16x384xf32>
    %c0_3 = arith.constant 0 : index
    %c0_4 = arith.constant 0 : index
    %3 = vector.load %arg3[%c0_3, %c0_4] : memref<1x384xf32, #tpu.memory_space<vmem>>, vector<1x384xf32>
    %4 = vector.broadcast %3 : vector<1x384xf32> to vector<16x384xf32>
    %5 = arith.addf %2, %4 : vector<16x384xf32>
    %6 = arith.truncf %5 : vector<16x384xf32> to vector<16x384xbf16>
    %c0_5 = arith.constant 0 : index
    %c0_6 = arith.constant 0 : index
    %7 = vector.load %arg4[%c0_5, %c0_6] : memref<16x384xbf16, #tpu.memory_space<vmem>>, vector<16x384xbf16>
    tpu.vector_store %arg4[%c0_5, %c0_6], %6 {strides = array<i32>} : memref<16x384xbf16, #tpu.memory_space<vmem>>, vector<16x384xbf16>,
    return
  }
  func.func @transform_0(%arg0: i32) -> (i32, i32) {
    %c0_i32 = arith.constant 0 : i32
    %c0_i32_0 = arith.constant 0 : i32
    return %arg0, %c0_i32 : i32, i32
  }
  func.func @transform_1(%arg0: i32) -> (i32, i32) {
    %c0_i32 = arith.constant 0 : i32
    %c0_i32_0 = arith.constant 0 : i32
    %c0_i32_1 = arith.constant 0 : i32
    return %c0_i32, %c0_i32_0 : i32, i32
  }
  func.func @transform_2(%arg0: i32) -> (i32, i32) {
    %c0_i32 = arith.constant 0 : i32
    %c0_i32_0 = arith.constant 0 : i32
    %c0_i32_1 = arith.constant 0 : i32
    return %c0_i32, %c0_i32_0 : i32, i32
  }
  func.func @transform_3(%arg0: i32) -> (i32, i32) {
    %c0_i32 = arith.constant 0 : i32
    %c0_i32_0 = arith.constant 0 : i32
    return %arg0, %c0_i32 : i32, i32
  }
}

module attributes {stable_mosaic.version = 11 : i64} {
  func.func @_linear_kernel(%arg0: i32, %arg1: memref<512x82xbf16, #tpu.memory_space<vmem>>, %arg2: memref<82x128xbf16, #tpu.memory_space<vmem>>, %arg3: memref<1x128xf32, #tpu.memory_space<vmem>>, %arg4: memref<512x128xbf16, #tpu.memory_space<vmem>>) attributes {dimension_semantics = [#tpu.dimension_semantics<parallel>], iteration_bounds = array<i64: 2>, scalar_prefetch = 0 : i64, scratch_operands = 0 : i64, tpu.core_type = #tpu.core_type<tc>, window_params = [{transform_indices = @transform_0, window_bounds = array<i64: 512, 82>}, {pipeline_mode = #tpu.pipeline_mode<synchronous>, transform_indices = @transform_1, window_bounds = array<i64: 82, 128>}, {pipeline_mode = #tpu.pipeline_mode<synchronous>, transform_indices = @transform_2, window_bounds = array<i64: 1, 128>}, {transform_indices = @transform_3, window_bounds = array<i64: 512, 128>}]} {
    %c0 = arith.constant 0 : index
    %c0_0 = arith.constant 0 : index
    %0 = vector.load %arg1[%c0, %c0_0] : memref<512x82xbf16, #tpu.memory_space<vmem>>, vector<512x82xbf16>
    %c0_1 = arith.constant 0 : index
    %c0_2 = arith.constant 0 : index
    %1 = vector.load %arg2[%c0_1, %c0_2] : memref<82x128xbf16, #tpu.memory_space<vmem>>, vector<82x128xbf16>
    %cst = arith.constant dense<0.000000e+00> : vector<512x128xf32>
    %2 = tpu.matmul %0, %1, %cst {dimension_numbers = #tpu.dot_dimension_numbers<[1], [0], [0], [1], [0, 0, 1, 1], [], []>} : vector<512x82xbf16>, vector<82x128xbf16>, vector<512x128xf32> -> vector<512x128xf32>
    %c0_3 = arith.constant 0 : index
    %c0_4 = arith.constant 0 : index
    %3 = vector.load %arg3[%c0_3, %c0_4] : memref<1x128xf32, #tpu.memory_space<vmem>>, vector<1x128xf32>
    %4 = vector.broadcast %3 : vector<1x128xf32> to vector<512x128xf32>
    %5 = arith.addf %2, %4 : vector<512x128xf32>
    %6 = arith.truncf %5 : vector<512x128xf32> to vector<512x128xbf16>
    %c0_5 = arith.constant 0 : index
    %c0_6 = arith.constant 0 : index
    %7 = vector.load %arg4[%c0_5, %c0_6] : memref<512x128xbf16, #tpu.memory_space<vmem>>, vector<512x128xbf16>
    tpu.vector_store %arg4[%c0_5, %c0_6], %6 {strides = array<i32>} : memref<512x128xbf16, #tpu.memory_space<vmem>>, vector<512x128xbf16>,
    return
  }
  func.func @transform_0(%arg0: i32) -> (i32, i32) {
    %c0_i32 = arith.constant 0 : i32
    %c0_i32_0 = arith.constant 0 : i32
    return %arg0, %c0_i32 : i32, i32
  }
  func.func @transform_1(%arg0: i32) -> (i32, i32) {
    %c0_i32 = arith.constant 0 : i32
    %c0_i32_0 = arith.constant 0 : i32
    %c0_i32_1 = arith.constant 0 : i32
    return %c0_i32, %c0_i32_0 : i32, i32
  }
  func.func @transform_2(%arg0: i32) -> (i32, i32) {
    %c0_i32 = arith.constant 0 : i32
    %c0_i32_0 = arith.constant 0 : i32
    %c0_i32_1 = arith.constant 0 : i32
    return %c0_i32, %c0_i32_0 : i32, i32
  }
  func.func @transform_3(%arg0: i32) -> (i32, i32) {
    %c0_i32 = arith.constant 0 : i32
    %c0_i32_0 = arith.constant 0 : i32
    return %arg0, %c0_i32 : i32, i32
  }
}

</mosaic_0001>

<bundles_post_ra>
// kernel: trfold_forward.6
= control target key start
LH: loop header
LB: loop body
LE: loop exit
PB: predicated region body
PF: predicated region fallthrough
CT: control target
= control target key end

     0   :  { %s820_s12 = smov 0   ;;  %s939_s0 = inlined_call_operand.vmem [shape: bf16[512,32], index: 0, kind: input, shape index: {}]   ;;  %s940_s1 = inlined_call_operand.vmem [shape: bf16[32,128], index: 1, kind: input, shape index: {}]   ;;  %s941_s2 = inlined_call_operand.vmem [shape: f32[1,128], index: 2, kind: input, shape index: {}]   ;;  %s942_s3 = inlined_call_operand.vmem [shape: bf16[512,128], index: 3, kind: output, shape index: {}]  }
   0x1 LB: > { %s565_s13 = sadd.s32 4294967295, %s798_s12   ;;  %p569_p0 = scmp.ge.s32.totalorder %s798_s12, 1  ;;  %s798_s12 = sphi %s820_s12, %s13_s12  }
   0x2   : > { %p138_p1 = scmp.lt.s32.totalorder %s798_s12, 3 }
   0x4   : > { %p139_p2 = pnand %p569_p0, %p138_p1 }
   0x5   : > { %s570_s16 = sshll.u32 (!%p139_p2), %s565_s13, 5 }
   0x6   : > { %142 = sbr.rel (%p139_p2) target bundleno = 214 (0xd6), region = 32  ;;  %p163_p3 = scmp.lt.s32.totalorder (!%p139_p2), %s570_s16, 63 }
   0xb   : > { %v681_v0 = vld [vmem:[%s940_s1 + $0x8] sm:$0xff]  ;;  %v680_v1 = vld [vmem:[%s940_s1] sm:$0xff]  ;;  %s944_s16 = smov (!%p163_p3, %s570_s16), 63  ;;  %vm307_vm0 = vcmask 261120  }
   0xc   : > { %362 = vmatpush.bf16.msra.mxu0 %v681_v0  ;;  %777 = vmatpush.bf16.msra.mxu1 %v681_v0  ;;  %s571_s19 = sshll.u32 %s944_s16, 2  ;;  %v879_v20 = vld [vmem:[%s941_s2] ss:$0 sm:$0xff] }
   0xd   : > { %778 = vmatpush.bf16.msra.mxu2 %v681_v0  ;;  %779 = vmatpush.bf16.msra.mxu3 %v681_v0  ;;  %s842_s22 = scalar_lea.vmem %s939_s0, %s571_s19  ;;  %s890_s27 = scalar_lea.vmem %s942_s3, %s571_s19 }
   0xe   : > { %v664_v2 = vld [vmem:[%s842_s22] sm:$0xff]  ;;  %v665_v6 = vld [vmem:[%s842_s22 + $0x8] sm:$0xff]  ;;  %v666_v10 = vld [vmem:[%s842_s22 + $0x10] sm:$0xff] }
   0xf   : > { %v668_v3 = vld [vmem:[%s842_s22 + $0x20] sm:$0xff]  ;;  %v669_v7 = vld [vmem:[%s842_s22 + $0x28] sm:$0xff]  ;;  %v670_v11 = vld [vmem:[%s842_s22 + $0x30] sm:$0xff] }
  0x10   : > { %363 = vmatpush.bf16.msra.mxu0 %v680_v1  ;;  %780 = vmatpush.bf16.msra.mxu1 %v680_v1  ;;  %v672_v4 = vld [vmem:[%s842_s22 + $0x40] sm:$0xff]  ;;  %v673_v8 = vld [vmem:[%s842_s22 + $0x48] sm:$0xff]  ;;  %v674_v12 = vld [vmem:[%s842_s22 + $0x50] sm:$0xff] }
  0x11   : > { %781 = vmatpush.bf16.msra.mxu2 %v680_v1  ;;  %782 = vmatpush.bf16.msra.mxu3 %v680_v1  ;;  %v676_v5 = vld [vmem:[%s842_s22 + $0x60] sm:$0xff]  ;;  %v677_v9 = vld [vmem:[%s842_s22 + $0x68] sm:$0xff]  ;;  %v678_v13 = vld [vmem:[%s842_s22 + $0x70] sm:$0xff] }
  0x12   : > { %v667_v14 = vld [vmem:[%s842_s22 + $0x18] sm:$0xff] }
  0x13   : > { %646 = vmatmul.msk.bf16.vlgmr.msra.gmra.mxu0 %vm307_vm0, %v664_v2  ;;  %650 = vmatmul.msk.bf16.vlgmr.msra.gmra.mxu1 %vm307_vm0, %v668_v3  ;;  %v671_v15 = vld [vmem:[%s842_s22 + $0x38] sm:$0xff] }
  0x14   : > { %654 = vmatmul.msk.bf16.vlgmr.msra.gmra.mxu2 %vm307_vm0, %v672_v4  ;;  %658 = vmatmul.msk.bf16.vlgmr.msra.gmra.mxu3 %vm307_vm0, %v676_v5  ;;  %v675_v16 = vld [vmem:[%s842_s22 + $0x58] sm:$0xff] }
  0x15   : > { %v679_v17 = vld [vmem:[%s842_s22 + $0x78] sm:$0xff] }
  0x23   : > { %647 = vmatmul.msk.bf16.gmra.mxu0 %vm307_vm0, %v665_v6  ;;  %651 = vmatmul.msk.bf16.gmra.mxu1 %vm307_vm0, %v669_v7 }
  0x24   : > { %655 = vmatmul.msk.bf16.gmra.mxu2 %vm307_vm0, %v673_v8  ;;  %659 = vmatmul.msk.bf16.gmra.mxu3 %vm307_vm0, %v677_v9 }
  0x33   : > { %648 = vmatmul.msk.bf16.gmra.mxu0 %vm307_vm0, %v666_v10  ;;  %652 = vmatmul.msk.bf16.gmra.mxu1 %vm307_vm0, %v670_v11 }
  0x34   : > { %656 = vmatmul.msk.bf16.gmra.mxu2 %vm307_vm0, %v674_v12  ;;  %660 = vmatmul.msk.bf16.gmra.mxu3 %vm307_vm0, %v678_v13 }
  0x43   : > { %649 = vmatmul.msk.bf16.gmra.mxu0 %vm307_vm0, %v667_v14  ;;  %653 = vmatmul.msk.bf16.gmra.mxu1 %vm307_vm0, %v671_v15 }
  0x44   : > { %657 = vmatmul.msk.bf16.gmra.mxu2 %vm307_vm0, %v675_v16  ;;  %661 = vmatmul.msk.bf16.gmra.mxu3 %vm307_vm0, %v679_v17 }
  0x90   : > { %v365_v18 = vpop.f32.mrf.mxu0  ;;  %v385_v19 = vpop.f32.mrf.mxu1 }
  0x91   : > { %v366_v25 = vadd.f32 %v879_v20, %v365_v18  ;;  %v386_v26 = vadd.f32 %v879_v20, %v385_v19 }
  0x97   : > { %v405_v21 = vpop.f32.mrf.mxu2  ;;  %v425_v22 = vpop.f32.mrf.mxu3 }
  0x98   : > { %v367_v23 = vpop.f32.mrf.mxu0  ;;  %v387_v24 = vpop.f32.mrf.mxu1  ;;  %v406_v33 = vadd.f32 %v879_v20, %v405_v21  ;;  %v426_v34 = vadd.f32 %v879_v20, %v425_v22 }
  0x99   : > { %v368_v27 = vadd.f32 %v879_v20, %v367_v23  ;;  %v388_v28 = vadd.f32 %v879_v20, %v387_v24 }
  0x9b   : > { %v685_v29 = vpack.c.bf16 %v368_v27, %v366_v25  ;;  %v705_v30 = vpack.c.bf16 %v388_v28, %v386_v26 }
  0x9d   : > { %686 = vst [vmem:[%s890_s27] sm:$0xff] %v685_v29  }
  0x9e   : > { %765 = vst [vmem:[%s890_s27 + $0x20] sm:$0xff] %v705_v30  }
  0x9f   : > { %v407_v31 = vpop.f32.mrf.mxu2  ;;  %v427_v32 = vpop.f32.mrf.mxu3 }
  0xa0   : > { %v408_v35 = vadd.f32 %v879_v20, %v407_v31  ;;  %v428_v36 = vadd.f32 %v879_v20, %v427_v32  ;;  %v370_v37 = vpop.f32.mrf.mxu0  ;;  %v390_v38 = vpop.f32.mrf.mxu1 }
  0xa1   : > { %v371_v45 = vadd.f32 %v879_v20, %v370_v37  ;;  %v391_v46 = vadd.f32 %v879_v20, %v390_v38 }
  0xa2   : > { %v725_v39 = vpack.c.bf16 %v408_v35, %v406_v33  ;;  %v745_v40 = vpack.c.bf16 %v428_v36, %v426_v34 }
  0xa4   : > { %769 = vst [vmem:[%s890_s27 + $0x40] sm:$0xff] %v725_v39  }
  0xa5   : > { %773 = vst [vmem:[%s890_s27 + $0x60] sm:$0xff] %v745_v40  }
  0xa7   : > { %v410_v41 = vpop.f32.mrf.mxu2  ;;  %v430_v42 = vpop.f32.mrf.mxu3 }
  0xa8   : > { %v372_v43 = vpop.f32.mrf.mxu0  ;;  %v392_v44 = vpop.f32.mrf.mxu1  ;;  %v411_v53 = vadd.f32 %v879_v20, %v410_v41  ;;  %v431_v54 = vadd.f32 %v879_v20, %v430_v42 }
  0xa9   : > { %v373_v47 = vadd.f32 %v879_v20, %v372_v43  ;;  %v393_v48 = vadd.f32 %v879_v20, %v392_v44 }
  0xab   : > { %v690_v49 = vpack.c.bf16 %v373_v47, %v371_v45  ;;  %v710_v50 = vpack.c.bf16 %v393_v48, %v391_v46 }
  0xad   : > { %762 = vst [vmem:[%s890_s27 + $0x8] sm:$0xff] %v690_v49  }
  0xae   : > { %766 = vst [vmem:[%s890_s27 + $0x28] sm:$0xff] %v710_v50  }
  0xaf   : > { %v412_v51 = vpop.f32.mrf.mxu2  ;;  %v432_v52 = vpop.f32.mrf.mxu3 }
  0xb0   : > { %v413_v55 = vadd.f32 %v879_v20, %v412_v51  ;;  %v433_v56 = vadd.f32 %v879_v20, %v432_v52  ;;  %v375_v57 = vpop.f32.mrf.mxu0  ;;  %v395_v58 = vpop.f32.mrf.mxu1 }
  0xb1   : > { %v376_v1 = vadd.f32 %v879_v20, %v375_v57  ;;  %v396_v2 = vadd.f32 %v879_v20, %v395_v58 }
  0xb2   : > { %v730_v59 = vpack.c.bf16 %v413_v55, %v411_v53  ;;  %v750_v60 = vpack.c.bf16 %v433_v56, %v431_v54 }
  0xb4   : > { %770 = vst [vmem:[%s890_s27 + $0x48] sm:$0xff] %v730_v59  }
  0xb5   : > { %774 = vst [vmem:[%s890_s27 + $0x68] sm:$0xff] %v750_v60  }
  0xb7   : > { %v415_v61 = vpop.f32.mrf.mxu2  ;;  %v435_v62 = vpop.f32.mrf.mxu3 }
  0xb8   : > { %v377_v63 = vpop.f32.mrf.mxu0  ;;  %v397_v0 = vpop.f32.mrf.mxu1  ;;  %v416_v9 = vadd.f32 %v879_v20, %v415_v61  ;;  %v436_v10 = vadd.f32 %v879_v20, %v435_v62 }
  0xb9   : > { %v378_v3 = vadd.f32 %v879_v20, %v377_v63  ;;  %v398_v4 = vadd.f32 %v879_v20, %v397_v0 }
  0xbb   : > { %v695_v5 = vpack.c.bf16 %v378_v3, %v376_v1  ;;  %v715_v6 = vpack.c.bf16 %v398_v4, %v396_v2 }
  0xbd   : > { %763 = vst [vmem:[%s890_s27 + $0x10] sm:$0xff] %v695_v5  }
  0xbe   : > { %767 = vst [vmem:[%s890_s27 + $0x30] sm:$0xff] %v715_v6  }
  0xbf   : > { %v417_v7 = vpop.f32.mrf.mxu2  ;;  %v437_v8 = vpop.f32.mrf.mxu3 }
  0xc0   : > { %v418_v11 = vadd.f32 %v879_v20, %v417_v7  ;;  %v438_v12 = vadd.f32 %v879_v20, %v437_v8  ;;  %v380_v13 = vpop.f32.mrf.mxu0  ;;  %v400_v14 = vpop.f32.mrf.mxu1 }
  0xc1   : > { %v381_v22 = vadd.f32 %v879_v20, %v380_v13  ;;  %v401_v23 = vadd.f32 %v879_v20, %v400_v14 }
  0xc2   : > { %v735_v15 = vpack.c.bf16 %v418_v11, %v416_v9  ;;  %v755_v16 = vpack.c.bf16 %v438_v12, %v436_v10 }
  0xc4   : > { %771 = vst [vmem:[%s890_s27 + $0x50] sm:$0xff] %v735_v15  }
  0xc5   : > { %775 = vst [vmem:[%s890_s27 + $0x70] sm:$0xff] %v755_v16  }
  0xc7   : > { %v420_v17 = vpop.f32.mrf.mxu2  ;;  %v440_v18 = vpop.f32.mrf.mxu3 }
  0xc8   : > { %v382_v19 = vpop.f32.mrf.mxu0  ;;  %v402_v21 = vpop.f32.mrf.mxu1  ;;  %v421_v30 = vadd.f32 %v879_v20, %v420_v17  ;;  %v441_v31 = vadd.f32 %v879_v20, %v440_v18 }
  0xc9   : > { %v383_v24 = vadd.f32 %v879_v20, %v382_v19  ;;  %v403_v25 = vadd.f32 %v879_v20, %v402_v21 }
  0xcb   : > { %v700_v26 = vpack.c.bf16 %v383_v24, %v381_v22  ;;  %v720_v27 = vpack.c.bf16 %v403_v25, %v401_v23 }
  0xcd   : > { %764 = vst [vmem:[%s890_s27 + $0x18] sm:$0xff] %v700_v26  }
  0xce   : > { %768 = vst [vmem:[%s890_s27 + $0x38] sm:$0xff] %v720_v27  }
  0xcf   : > { %v422_v28 = vpop.f32.mrf.mxu2  ;;  %v442_v29 = vpop.f32.mrf.mxu3 }
  0xd0   : > { %v423_v32 = vadd.f32 %v879_v20, %v422_v28  ;;  %v443_v33 = vadd.f32 %v879_v20, %v442_v29 }
  0xd2   : > { %v740_v34 = vpack.c.bf16 %v423_v32, %v421_v30  ;;  %v760_v35 = vpack.c.bf16 %v443_v33, %v441_v31 }
  0xd4   : > { %772 = vst [vmem:[%s890_s27 + $0x58] sm:$0xff] %v740_v34  }
  0xd5   : > { %776 = vst [vmem:[%s890_s27 + $0x78] sm:$0xff] %v760_v35  }
  0xd6 PF: > { %s13_s12 = sadd.s32 1, %s798_s12  }
  0xd7   : > { %p10_p4 = scmp.ge.s32.totalorder %s13_s12, 4  }
  0xd9   :  { %12 = sbr.rel (!%p10_p4) target bundleno = 1 (0x1), region = 62 }

// kernel: trfold_forward.5
= control target key start
LH: loop header
LB: loop body
LE: loop exit
PB: predicated region body
PF: predicated region fallthrough
CT: control target
= control target key end

     0   :  { %s448_s12 = smov 0   ;;  %s474_s0 = inlined_call_operand.vmem [shape: bf16[128,32], index: 0, kind: input, shape index: {}]   ;;  %s475_s1 = inlined_call_operand.vmem [shape: bf16[32,128], index: 1, kind: input, shape index: {}]   ;;  %s476_s2 = inlined_call_operand.vmem [shape: f32[1,128], index: 2, kind: input, shape index: {}]   ;;  %s477_s3 = inlined_call_operand.vmem [shape: bf16[128,128], index: 3, kind: output, shape index: {}]  }
   0x1 LB: > { %s337_s13 = sadd.s32 4294967295, %s426_s12   ;;  %p341_p0 = scmp.ge.s32.totalorder %s426_s12, 1  ;;  %s426_s12 = sphi %s448_s12, %s13_s12  }
   0x2   : > { %p138_p1 = scmp.lt.s32.totalorder %s426_s12, 3 }
   0x4   : > { %p139_p2 = pnand %p341_p0, %p138_p1 }
   0x5   : > { %s342_s16 = sshll.u32 (!%p139_p2), %s337_s13, 3 }
   0x6   : > { %142 = sbr.rel (%p139_p2) target bundleno = 166 (0xa6), region = 32  ;;  %p163_p3 = scmp.lt.s32.totalorder (!%p139_p2), %s342_s16, 15 }
   0xb   : > { %v381_v0 = vld [vmem:[%s475_s1 + $0x8] sm:$0xff]  ;;  %v380_v1 = vld [vmem:[%s475_s1] sm:$0xff]  ;;  %s479_s16 = smov (!%p163_p3, %s342_s16), 15  ;;  %vm223_vm0 = vcmask 261120  }
   0xc   : > { %242 = vmatpush.bf16.msra.mxu0 %v381_v0  ;;  %405 = vmatpush.bf16.msra.mxu1 %v381_v0  ;;  %s343_s19 = sshll.u32 %s479_s16, 2  ;;  %v419_v8 = vld [vmem:[%s476_s2] ss:$0 sm:$0xff] }
   0xd   : > { %406 = vmatpush.bf16.msra.mxu2 %v381_v0  ;;  %407 = vmatpush.bf16.msra.mxu3 %v381_v0  ;;  %s166_s22 = scalar_lea.vmem %s474_s0, %s343_s19  ;;  %s172_s27 = scalar_lea.vmem %s477_s3, %s343_s19 }
   0xe   : > { %v376_v2 = vld [vmem:[%s166_s22] sm:$0xff]  ;;  %v377_v3 = vld [vmem:[%s166_s22 + $0x8] sm:$0xff]  ;;  %v378_v4 = vld [vmem:[%s166_s22 + $0x10] sm:$0xff] }
   0xf   : > { %v379_v5 = vld [vmem:[%s166_s22 + $0x18] sm:$0xff] }
  0x10   : > { %243 = vmatpush.bf16.msra.mxu0 %v380_v1  ;;  %408 = vmatpush.bf16.msra.mxu1 %v380_v1 }
  0x11   : > { %409 = vmatpush.bf16.msra.mxu2 %v380_v1  ;;  %410 = vmatpush.bf16.msra.mxu3 %v380_v1 }
  0x13   : > { %370 = vmatmul.msk.bf16.vlgmr.msra.gmra.mxu0 %vm223_vm0, %v376_v2  ;;  %371 = vmatmul.msk.bf16.vlgmr.msra.gmra.mxu1 %vm223_vm0, %v377_v3 }
  0x14   : > { %372 = vmatmul.msk.bf16.vlgmr.msra.gmra.mxu2 %vm223_vm0, %v378_v4  ;;  %373 = vmatmul.msk.bf16.vlgmr.msra.gmra.mxu3 %vm223_vm0, %v379_v5 }
  0x90   : > { %v245_v6 = vpop.f32.mrf.mxu0  ;;  %v250_v7 = vpop.f32.mrf.mxu1 }
  0x91   : > { %v246_v13 = vadd.f32 %v419_v8, %v245_v6  ;;  %v251_v14 = vadd.f32 %v419_v8, %v250_v7 }
  0x97   : > { %v255_v9 = vpop.f32.mrf.mxu2  ;;  %v260_v10 = vpop.f32.mrf.mxu3 }
  0x98   : > { %v247_v11 = vpop.f32.mrf.mxu0  ;;  %v252_v12 = vpop.f32.mrf.mxu1  ;;  %v256_v21 = vadd.f32 %v419_v8, %v255_v9  ;;  %v261_v22 = vadd.f32 %v419_v8, %v260_v10 }
  0x99   : > { %v248_v15 = vadd.f32 %v419_v8, %v247_v11  ;;  %v253_v16 = vadd.f32 %v419_v8, %v252_v12 }
  0x9b   : > { %v385_v17 = vpack.c.bf16 %v248_v15, %v246_v13  ;;  %v390_v18 = vpack.c.bf16 %v253_v16, %v251_v14 }
  0x9d   : > { %386 = vst [vmem:[%s172_s27] sm:$0xff] %v385_v17  }
  0x9e   : > { %402 = vst [vmem:[%s172_s27 + $0x8] sm:$0xff] %v390_v18  }
  0x9f   : > { %v257_v19 = vpop.f32.mrf.mxu2  ;;  %v262_v20 = vpop.f32.mrf.mxu3 }
  0xa0   : > { %v258_v23 = vadd.f32 %v419_v8, %v257_v19  ;;  %v263_v24 = vadd.f32 %v419_v8, %v262_v20 }
  0xa2   : > { %v395_v25 = vpack.c.bf16 %v258_v23, %v256_v21  ;;  %v400_v26 = vpack.c.bf16 %v263_v24, %v261_v22 }
  0xa4   : > { %403 = vst [vmem:[%s172_s27 + $0x10] sm:$0xff] %v395_v25  }
  0xa5   : > { %404 = vst [vmem:[%s172_s27 + $0x18] sm:$0xff] %v400_v26  }
  0xa6 PF: > { %s13_s12 = sadd.s32 1, %s426_s12  }
  0xa7   : > { %p10_p4 = scmp.ge.s32.totalorder %s13_s12, 4  }
  0xa9   :  { %12 = sbr.rel (!%p10_p4) target bundleno = 1 (0x1), region = 62 }

// kernel: trfold_forward.7
= control target key start
LH: loop header
LB: loop body
LE: loop exit
PB: predicated region body
PF: predicated region fallthrough
CT: control target
= control target key end

     0   :  { %8 = vsyncpa [#allocation3], 0  ;;  %s666_s0 = inlined_call_operand.vmem [shape: bf16[32,32], index: 0, kind: input, shape index: {}]   ;;  %s667_s1 = inlined_call_operand.vmem [shape: bf16[32,384], index: 1, kind: input, shape index: {}]   ;;  %s668_s2 = inlined_call_operand.vmem [shape: f32[1,384], index: 2, kind: input, shape index: {}]   ;;  %s669_s3 = inlined_call_operand.hbm [shape: bf16[32,384], index: 3, kind: output, shape index: {}]  }
   0x1   :  { %10 = vsyncpa [#allocation3 + $0x1], 0  ;;  %s539_s12 = smov 0   ;;  %s541_s13 = smov 0  }
   0x2   :  { %s543_s14 = smov 0   ;;  %s545_s15 = smov 0  }
   0x3 LB: > { %s560_s16 = sadd.s32 4294967295, %s515_s15   ;;  %s361_s17 = sadd.s32 4294967294, %s515_s15   ;;  %s515_s15 = sphi %s545_s15, %s675_s15   ;;  %s511_s14 = sphi %s543_s14, %s674_s14   ;;  %s507_s13 = sphi %s541_s13, %s673_s13   ;;  %s503_s12 = sphi %s539_s12, %s672_s12  }
   0x4   : > { %s564_s18 = sadd.s32 1, %s515_s15   ;;  %s91_s19 = sadd.s32 1, %s511_s14 }
   0x5   : > { %s88_s20 = ssub.s32 %s515_s15, %s564_s18  ;;  %p101_p0 = scmp.ne.s32.totalorder %s511_s14, %s507_s13 }
   0x6   : > { %p89_p1 = scmp.eq.s32.totalorder %s88_s20, 0  ;;  %p102_p2 = scmp.eq.s32.totalorder %s560_s16, 1 }
   0x7   : > { %p107_p3 = scmp.ne.s32.totalorder %s507_s13, %s503_s12  ;;  %p108_p4 = scmp.eq.s32.totalorder %s361_s17, 1 }
   0x8   : > { %s575_s21 = scalar_select %p89_p1, %s511_s14, %s91_s19  }
   0x9   : > { %p577_p5 = por %p102_p2, %p101_p0  ;;  %p581_p6 = por %p108_p4, %p107_p3 }
   0xa   : > { %p364_p7 = scmp.ge.s32.totalorder %s515_s15, 1  ;;  %p141_p8 = scmp.lt.s32.totalorder %s515_s15, 3 }
   0xc   : > { %p142_p9 = pnand %p364_p7, %p141_p8 }
   0xd   : > { %s365_s30 = sshll.u32 (!%p142_p9), %s560_s16, 1  ;;  %s162_s10 = sand.u32 (!%p142_p9), 1, %s507_s13  }
   0xe   : > { %145 = sbr.rel (%p142_p9) target bundleno = 178 (0xb2), region = 32  ;;  %p166_p10 = scmp.lt.s32.totalorder (!%p142_p9), %s365_s30, 3 }
   0xf   : > { %s410_s11 = smul.u32 (!%p142_p9), 24, %s162_s10  ;;  %s473_s5 = scalar_lea.hbm (!%p142_p9), %s669_s3, 48 }
  0x10   : > { %s411_s19 = smul.u32 (!%p142_p9), 24, %s560_s16  ;;  %s283_s16 = scalar_lea.sflag (!%p142_p9), [#allocation3], %s162_s10 }
  0x11   : > { %s164_s17 = scalar_lea.vmem (!%p142_p9), [#allocation2], %s410_s11 }
  0x12   : > { %s295_s25 = scalar_lea.hbm (!%p142_p9), %s669_s3, %s411_s19  ;;  %s296_s26 = sshll.u32 (!%p142_p9), %s164_s17, 4  ;;  %s297_s26 = int_to_ptr.vmem [resolvable:$true] %s296_s26 }
  0x13   : > { %v385_v0 = vld [vmem:[%s667_s1 + $0x18] sm:$0xf]  ;;  %v408_v1 = vld [vmem:[%s667_s1 + $0x20] sm:$0xf0]  ;;  %v407_v2 = vld [vmem:[%s667_s1 + $0x1c] sm:$0xf] }
  0x14   : > { %v386_v3 = vor.u32 %v408_v1, %v385_v0  ;;  %v387_v4 = vld [vmem:[%s667_s1 + $0x24] sm:$0xf0]  ;;  %v393_v5 = vld [vmem:[%s667_s1 + $0x20] sm:$0xf]  ;;  %v409_v6 = vld [vmem:[%s667_s1 + $0x28] sm:$0xf0] }
  0x15   : > { %v390_v7 = vor.u32 %v407_v2, %v387_v4  ;;  %v394_v8 = vor.u32 %v409_v6, %v393_v5  ;;  %v373_v9 = vld [vmem:[%s667_s1] sm:$0xf]  ;;  %v405_v10 = vld [vmem:[%s667_s1 + $0x8] sm:$0xf0]  ;;  %v404_v11 = vld [vmem:[%s667_s1 + $0x4] sm:$0xf] }
  0x16   : > { %238 = vmatpush.bf16.msra.mxu0 %v386_v3  ;;  %v374_v12 = vor.u32 %v405_v10, %v373_v9  ;;  %v375_v13 = vld [vmem:[%s667_s1 + $0xc] sm:$0xf0]  ;;  %v381_v14 = vld [vmem:[%s667_s1 + $0x8] sm:$0xf]  ;;  %v406_v15 = vld [vmem:[%s667_s1 + $0x10] sm:$0xf0] }
  0x17   : > { %252 = vmatpush.bf16.msra.mxu1 %v390_v7  ;;  %266 = vmatpush.bf16.msra.mxu2 %v394_v8  ;;  %v378_v16 = vor.u32 %v404_v11, %v375_v13  ;;  %v382_v17 = vor.u32 %v406_v15, %v381_v14  ;;  %s677_s30 = smov (!%p166_p10, %s365_s30), 3  ;;  %vm228_vm0 = vcmask 261120   ;;  %v183_v19 = vld [vmem:[%s668_s2] sm:$0x7]  ;;  %s298_s27 = sshll.u32 %s295_s25, 4  ;;  %s299_s27 = int_to_ptr.hbm [resolvable:$true] %s298_s27 }
  0x18   : > { %s366_s4 = sshll.u32 %s677_s30, 2  ;;  %v185_v20 = vperm.slane %v183_v19, 0  ;;  %v186_v21 = vperm.slane %v183_v19, 1  ;;  %v187_v27 = vperm.slane %v183_v19, 2  ;;  %s467_s28 = sshra.s32 %s299_s27, 4  ;;  %s468_s28 = int_to_ptr.hbm [resolvable:$true] %s467_s28 }
  0x19   : > { %s169_s7 = scalar_lea.vmem %s666_s0, %s366_s4  ;;  %s469_s29 = scalar_lea.hbm %s468_s28, 24 }
  0x1a   : > { %239 = vmatpush.bf16.msra.mxu0 %v374_v12  ;;  %v403_v18 = vld [vmem:[%s169_s7] sm:$0xff]  ;;  %p470_p11 = scmp.ne.s32.totalorder %s468_s28, %s469_s29  ;;  %p474_p0 = scmp.lt.s32.totalorder %s468_s28, %s669_s3 }
  0x1b   : > { %253 = vmatpush.bf16.msra.mxu1 %v378_v16  ;;  %267 = vmatpush.bf16.msra.mxu2 %v382_v17  ;;  %p475_p1 = scmp.lt.s32.totalorder %s473_s5, %s469_s29 }
  0x1c   : > { %p471_p12 = pnand %p470_p11, %p577_p5 }
  0x1d   : > { %395 = vmatmul.msk.bf16.vlgmr.msra.gmra.mxu0 %vm228_vm0, %v403_v18  ;;  %p476_p2 = por %p475_p1, %p474_p0 }
  0x1e   : > { %396 = vmatmul.msk.bf16.vlgmr.msra.gmra.mxu1 %vm228_vm0, %v403_v18  ;;  %397 = vmatmul.msk.bf16.vlgmr.msra.gmra.mxu2 %vm228_vm0, %v403_v18  ;;  %p472_p13 = pneg %p471_p12 }
  0x20   : > { %p477_p3 = pnand %p476_p2, %p472_p13 }
  0x9a   : > { %v241_v22 = vpop.f32.mrf.mxu0 }
  0x9b   : > { %v255_v23 = vpop.f32.mrf.mxu1  ;;  %v242_v24 = vadd.f32 %v241_v22, %v185_v20 }
  0x9c   : > { %v256_v25 = vadd.f32 %v255_v23, %v186_v21 }
  0x9e   : > { %v274_v26 = vpack.c.bf16 %v256_v25, %v242_v24 }
  0xa0   : > { %278 = vst [vmem:[%s164_s17] sm:$0xff] %v274_v26 }
  0xa1   : > { %v269_v28 = vpop.f32.mrf.mxu2 }
  0xa2   : > { %v270_v29 = vadd.f32 %v269_v28, %v187_v27  ;;  %v243_v30 = vpop.f32.mrf.mxu0 }
  0xa3   : > { %v257_v31 = vpop.f32.mrf.mxu1  ;;  %v244_v32 = vadd.f32 %v243_v30, %v185_v20 }
  0xa4   : > { %v258_v33 = vadd.f32 %v257_v31, %v186_v21  ;;  %v275_v34 = vpack.c.bf16 %v270_v29, %v270_v29 }
  0xa6   : > { %v276_v35 = vpack.c.bf16 %v258_v33, %v244_v32  ;;  %279 = vst [vmem:[%s164_s17 + $0x8] sm:$0xf] %v275_v34 }
  0xa8   : > { %280 = vst [vmem:[%s164_s17 + $0xc] sm:$0xff] %v276_v35 }
  0xa9   : > { %v271_v36 = vpop.f32.mrf.mxu2 }
  0xaa   : > { %v272_v37 = vadd.f32 %v271_v36, %v187_v27 }
  0xac   : > { %v277_v38 = vpack.c.bf16 %v272_v37, %v272_v37 }
  0xae   : > { %281 = vst [vmem:[%s164_s17 + $0x14] sm:$0xf] %v277_v38 }
  0xaf   : > { %480 = shalt.err (!%p477_p3)
}
  0xb0   : > { %s517_s8 = smov 192   ;;  %s518_s9 = smov 12  }
  0xb1   : > { %412 = dma.vmem_to_hbm [thread:$0]  (%p577_p5), %s297_s26, 384, %s299_s27, %s283_s16, %s517_s8, %s517_s8, %s518_s9  }
  0xb2 PF: > { %p418_p4 = scmp.ge.s32.totalorder %s515_s15, 2  ;;  %s313_s10 = sand.u32 1, %s503_s12  }
  0xb3   : > { %s314_s11 = scalar_lea.sflag [#allocation3], %s313_s10 }
  0xb4   : > { %p415_p7 = pnand %p418_p4, %p581_p6 }
  0xb6   : > { %p416_p8 = pneg %p415_p7 }
  0xb8   : > { %498 = dma.done.wait (%p416_p8), %s314_s11, 384  }
  0xb9   : > { %500 = vsyncadd (%p416_p8), %s314_s11, 4294966912  ;;  %p13_p9 = scmp.ge.s32.totalorder %s564_s18, 4   ;;  %s672_s12 = smov %s507_s13 }
  0xba   : > { %s673_s13 = smov %s511_s14  ;;  %s674_s14 = smov %s575_s21 }
  0xbb   : > { %s675_s15 = smov %s564_s18  ;;  %15 = sbr.rel (!%p13_p9) target bundleno = 3 (0x3), region = 67 }
  0xc0   :  { %320 = vsyncpa [#allocation3], 1 }
  0xc1   :  { %322 = vsyncpa [#allocation3 + $0x1], 1 }

// kernel: trfold_forward.4
= control target key start
LH: loop header
LB: loop body
LE: loop exit
PB: predicated region body
PF: predicated region fallthrough
CT: control target
= control target key end

     0   :  { %8 = vsyncpa [#allocation3], 0  ;;  %s1764_s0 = inlined_call_operand.vmem [shape: bf16[1024,82], index: 0, kind: input, shape index: {}]   ;;  %s1765_s1 = inlined_call_operand.vmem [shape: bf16[82,128], index: 1, kind: input, shape index: {}]   ;;  %s1766_s2 = inlined_call_operand.vmem [shape: f32[1,128], index: 2, kind: input, shape index: {}]   ;;  %s1767_s3 = inlined_call_operand.hbm [shape: bf16[1024,128], index: 3, kind: output, shape index: {}]  }
   0x1   :  { %10 = vsyncpa [#allocation3 + $0x1], 0  ;;  %s1488_s12 = smov 0   ;;  %s1490_s13 = smov 0  }
   0x2   :  { %s1492_s14 = smov 0   ;;  %s1494_s15 = smov 0  }
   0x3 LB: > { %s1509_s16 = sadd.s32 4294967295, %s1464_s15   ;;  %s921_s17 = sadd.s32 4294967294, %s1464_s15   ;;  %s1464_s15 = sphi %s1494_s15, %s1773_s15   ;;  %s1460_s14 = sphi %s1492_s14, %s1772_s14   ;;  %s1456_s13 = sphi %s1490_s13, %s1771_s13   ;;  %s1452_s12 = sphi %s1488_s12, %s1770_s12  }
   0x4   : > { %s1513_s18 = sadd.s32 1, %s1464_s15   ;;  %s91_s19 = sadd.s32 1, %s1460_s14 }
   0x5   : > { %s88_s20 = ssub.s32 %s1464_s15, %s1513_s18  ;;  %p101_p0 = scmp.ne.s32.totalorder %s1460_s14, %s1456_s13 }
   0x6   : > { %p89_p1 = scmp.eq.s32.totalorder %s88_s20, 0  ;;  %p102_p2 = scmp.eq.s32.totalorder %s1509_s16, 1 }
   0x7   : > { %p107_p3 = scmp.ne.s32.totalorder %s1456_s13, %s1452_s12  ;;  %p108_p4 = scmp.eq.s32.totalorder %s921_s17, 1 }
   0x8   : > { %s1524_s21 = scalar_select %p89_p1, %s1460_s14, %s91_s19  }
   0x9   : > { %p1526_p5 = por %p102_p2, %p101_p0  ;;  %p1530_p6 = por %p108_p4, %p107_p3 }
   0xa   : > { %p924_p7 = scmp.ge.s32.totalorder %s1464_s15, 1  ;;  %p141_p8 = scmp.lt.s32.totalorder %s1464_s15, 3 }
   0xc   : > { %p142_p9 = pnand %p924_p7, %p141_p8 }
   0xd   : > { %s926_s28 = sshll.u32 (!%p142_p9), %s1509_s16, 6  ;;  %s162_s20 = sand.u32 (!%p142_p9), 1, %s1456_s13  }
   0xe   : > { %145 = sbr.rel (%p142_p9) target bundleno = 310 (0x136), region = 32  ;;  %p166_p10 = scmp.lt.s32.totalorder (!%p142_p9), %s926_s28, 127 }
   0xf   : > { %s925_s26 = sshll.u32 (!%p142_p9), %s162_s20, 8  ;;  %s1422_s11 = scalar_lea.hbm (!%p142_p9), %s1767_s3, 512 }
  0x10   : > { %s1636_s27 = scalar_lea.vmem (!%p142_p9), [#allocation2], %s925_s26 }
  0x11   : > { %s856_s5 = sshll.u32 (!%p142_p9), %s1636_s27, 4  ;;  %s857_s5 = int_to_ptr.vmem [resolvable:$true] %s856_s5 }
  0x13   : > { %v247_v0 = vld [vmem:[%s1765_s1 + $0x28] sm:$0x1]  ;;  %vm542_vm0 = vcmask 1040384   ;;  %v1149_v4 = vld [vmem:[%s1765_s1 + $0x20] sm:$0xff]  ;;  %v1148_v5 = vld [vmem:[%s1765_s1 + $0x18] sm:$0xff]  ;;  %s1775_s28 = smov (!%p166_p10, %s926_s28), 127 }
  0x14   : > { %v433_v1 = vunpack.c.l.b16 %v247_v0  ;;  %v1147_v6 = vld [vmem:[%s1765_s1 + $0x10] sm:$0xff]  ;;  %v1146_v7 = vld [vmem:[%s1765_s1 + $0x8] sm:$0xff]  ;;  %s927_s8 = sshll.u32 %s1775_s28, 2  ;;  %v1145_v8 = vld [vmem:[%s1765_s1] sm:$0xff]  ;;  %vm445_vm1 = vcmask 670720   ;;  %s1150_s28 = sshll.u32 %s1509_s16, 8 }
  0x15   : > { %s1558_s19 = scalar_lea.vmem %s1764_s0, %s927_s8  ;;  %v1628_v43 = vld [vmem:[%s1766_s2] ss:$0 sm:$0xff]  ;;  %s855_s4 = scalar_lea.hbm %s1767_s3, %s1150_s28 }
  0x16   : > { %v439_v2 = vpack.c.b16 %v433_v1, %v433_v1  ;;  %v1113_v9 = vld [vmem:[%s1558_s19] sm:$0xff]  ;;  %v1114_v13 = vld [vmem:[%s1558_s19 + $0x8] sm:$0xff]  ;;  %v1115_v17 = vld [vmem:[%s1558_s19 + $0x10] sm:$0xff]  ;;  %s858_s6 = sshll.u32 %s855_s4, 4  ;;  %s844_s16 = scalar_lea.sflag [#allocation3], %s162_s20  ;;  %s859_s6 = int_to_ptr.hbm [resolvable:$true] %s858_s6 }
  0x17   : > { %v1121_v10 = vld [vmem:[%s1558_s19 + $0x40] sm:$0xff]  ;;  %v1122_v14 = vld [vmem:[%s1558_s19 + $0x48] sm:$0xff]  ;;  %v1123_v18 = vld [vmem:[%s1558_s19 + $0x50] sm:$0xff]  ;;  %s1416_s7 = sshra.s32 %s859_s6, 4  ;;  %s1417_s7 = int_to_ptr.hbm [resolvable:$true] %s1416_s7 }
  0x18   : > { %v544_v3 = vsel %vm542_vm0, %v439_v2, 0  ;;  %v1129_v11 = vld [vmem:[%s1558_s19 + $0x80] sm:$0xff]  ;;  %v1130_v15 = vld [vmem:[%s1558_s19 + $0x88] sm:$0xff]  ;;  %v1131_v19 = vld [vmem:[%s1558_s19 + $0x90] sm:$0xff]  ;;  %s1418_s8 = scalar_lea.hbm %s1417_s7, 256  ;;  %p1423_p0 = scmp.lt.s32.totalorder %s1417_s7, %s1767_s3 }
  0x19   : > { %548 = vmatpush.bf16.msra.mxu0 %v544_v3  ;;  %1342 = vmatpush.bf16.msra.mxu1 %v544_v3  ;;  %v1137_v12 = vld [vmem:[%s1558_s19 + $0xc0] sm:$0xff]  ;;  %v1138_v16 = vld [vmem:[%s1558_s19 + $0xc8] sm:$0xff]  ;;  %v1139_v20 = vld [vmem:[%s1558_s19 + $0xd0] sm:$0xff]  ;;  %p1419_p11 = scmp.ne.s32.totalorder %s1417_s7, %s1418_s8  ;;  %p1424_p1 = scmp.lt.s32.totalorder %s1422_s11, %s1418_s8 }
  0x1a   : > { %1343 = vmatpush.bf16.msra.mxu2 %v544_v3  ;;  %1344 = vmatpush.bf16.msra.mxu3 %v544_v3  ;;  %v1116_v21 = vld [vmem:[%s1558_s19 + $0x18] sm:$0xff]  ;;  %v1117_v25 = vld [vmem:[%s1558_s19 + $0x20] sm:$0xff]  ;;  %v1118_v29 = vld [vmem:[%s1558_s19 + $0x28] sm:$0xff] }
  0x1b   : > { %v1124_v22 = vld [vmem:[%s1558_s19 + $0x58] sm:$0xff]  ;;  %v1125_v26 = vld [vmem:[%s1558_s19 + $0x60] sm:$0xff]  ;;  %v1126_v30 = vld [vmem:[%s1558_s19 + $0x68] sm:$0xff]  ;;  %p1420_p12 = pnand %p1419_p11, %p1526_p5  ;;  %p1425_p2 = por %p1424_p1, %p1423_p0 }
  0x1c   : > { %v1132_v23 = vld [vmem:[%s1558_s19 + $0x98] sm:$0xff]  ;;  %v1133_v27 = vld [vmem:[%s1558_s19 + $0xa0] sm:$0xff]  ;;  %v1134_v31 = vld [vmem:[%s1558_s19 + $0xa8] sm:$0xff] }
  0x1d   : > { %549 = vmatpush.bf16.msra.mxu0 %v1149_v4  ;;  %1345 = vmatpush.bf16.msra.mxu1 %v1149_v4  ;;  %v1140_v24 = vld [vmem:[%s1558_s19 + $0xd8] sm:$0xff]  ;;  %v1141_v28 = vld [vmem:[%s1558_s19 + $0xe0] sm:$0xff]  ;;  %v1142_v32 = vld [vmem:[%s1558_s19 + $0xe8] sm:$0xff]  ;;  %p1421_p13 = pneg %p1420_p12 }
  0x1e   : > { %1346 = vmatpush.bf16.msra.mxu2 %v1149_v4  ;;  %1347 = vmatpush.bf16.msra.mxu3 %v1149_v4  ;;  %v1119_v33 = vld [vmem:[%s1558_s19 + $0x30] sm:$0xff]  ;;  %v1120_v37 = vld [vmem:[%s1558_s19 + $0x38] sm:$0xff] }
  0x1f   : > { %v1127_v34 = vld [vmem:[%s1558_s19 + $0x70] sm:$0xff]  ;;  %v1128_v38 = vld [vmem:[%s1558_s19 + $0x78] sm:$0xff]  ;;  %p1426_p3 = pnand %p1425_p2, %p1421_p13 }
  0x20   : > { %v1135_v35 = vld [vmem:[%s1558_s19 + $0xb0] sm:$0xff]  ;;  %v1136_v39 = vld [vmem:[%s1558_s19 + $0xb8] sm:$0xff] }
  0x21   : > { %550 = vmatpush.bf16.msra.mxu0 %v1148_v5  ;;  %1348 = vmatpush.bf16.msra.mxu1 %v1148_v5  ;;  %v1143_v36 = vld [vmem:[%s1558_s19 + $0xf0] sm:$0xff]  ;;  %v1144_v40 = vld [vmem:[%s1558_s19 + $0xf8] sm:$0xff] }
  0x22   : > { %1349 = vmatpush.bf16.msra.mxu2 %v1148_v5  ;;  %1350 = vmatpush.bf16.msra.mxu3 %v1148_v5 }
  0x25   : > { %551 = vmatpush.bf16.msra.mxu0 %v1147_v6  ;;  %1351 = vmatpush.bf16.msra.mxu1 %v1147_v6 }
  0x26   : > { %1352 = vmatpush.bf16.msra.mxu2 %v1147_v6  ;;  %1353 = vmatpush.bf16.msra.mxu3 %v1147_v6 }
  0x29   : > { %552 = vmatpush.bf16.msra.mxu0 %v1146_v7  ;;  %1354 = vmatpush.bf16.msra.mxu1 %v1146_v7 }
  0x2a   : > { %1355 = vmatpush.bf16.msra.mxu2 %v1146_v7  ;;  %1356 = vmatpush.bf16.msra.mxu3 %v1146_v7 }
  0x2d   : > { %553 = vmatpush.bf16.msra.mxu0 %v1145_v8  ;;  %1357 = vmatpush.bf16.msra.mxu1 %v1145_v8 }
  0x2e   : > { %1358 = vmatpush.bf16.msra.mxu2 %v1145_v8  ;;  %1359 = vmatpush.bf16.msra.mxu3 %v1145_v8 }
  0x30   : > { %1076 = vmatmul.msk.bf16.vlgmr.msra.gmra.mxu0 %vm445_vm1, %v1113_v9  ;;  %1084 = vmatmul.msk.bf16.vlgmr.msra.gmra.mxu1 %vm445_vm1, %v1121_v10 }
  0x31   : > { %1092 = vmatmul.msk.bf16.vlgmr.msra.gmra.mxu2 %vm445_vm1, %v1129_v11  ;;  %1100 = vmatmul.msk.bf16.vlgmr.msra.gmra.mxu3 %vm445_vm1, %v1137_v12 }
  0x40   : > { %1077 = vmatmul.msk.bf16.gmra.mxu0 %vm445_vm1, %v1114_v13  ;;  %1085 = vmatmul.msk.bf16.gmra.mxu1 %vm445_vm1, %v1122_v14 }
  0x41   : > { %1093 = vmatmul.msk.bf16.gmra.mxu2 %vm445_vm1, %v1130_v15  ;;  %1101 = vmatmul.msk.bf16.gmra.mxu3 %vm445_vm1, %v1138_v16 }
  0x50   : > { %1078 = vmatmul.msk.bf16.gmra.mxu0 %vm445_vm1, %v1115_v17  ;;  %1086 = vmatmul.msk.bf16.gmra.mxu1 %vm445_vm1, %v1123_v18 }
  0x51   : > { %1094 = vmatmul.msk.bf16.gmra.mxu2 %vm445_vm1, %v1131_v19  ;;  %1102 = vmatmul.msk.bf16.gmra.mxu3 %vm445_vm1, %v1139_v20 }
  0x60   : > { %1079 = vmatmul.msk.bf16.gmra.mxu0 %vm445_vm1, %v1116_v21  ;;  %1087 = vmatmul.msk.bf16.gmra.mxu1 %vm445_vm1, %v1124_v22 }
  0x61   : > { %1095 = vmatmul.msk.bf16.gmra.mxu2 %vm445_vm1, %v1132_v23  ;;  %1103 = vmatmul.msk.bf16.gmra.mxu3 %vm445_vm1, %v1140_v24 }
  0x70   : > { %1080 = vmatmul.msk.bf16.gmra.mxu0 %vm445_vm1, %v1117_v25  ;;  %1088 = vmatmul.msk.bf16.gmra.mxu1 %vm445_vm1, %v1125_v26 }
  0x71   : > { %1096 = vmatmul.msk.bf16.gmra.mxu2 %vm445_vm1, %v1133_v27  ;;  %1104 = vmatmul.msk.bf16.gmra.mxu3 %vm445_vm1, %v1141_v28 }
  0x80   : > { %1081 = vmatmul.msk.bf16.gmra.mxu0 %vm445_vm1, %v1118_v29  ;;  %1089 = vmatmul.msk.bf16.gmra.mxu1 %vm445_vm1, %v1126_v30 }
  0x81   : > { %1097 = vmatmul.msk.bf16.gmra.mxu2 %vm445_vm1, %v1134_v31  ;;  %1105 = vmatmul.msk.bf16.gmra.mxu3 %vm445_vm1, %v1142_v32 }
  0x90   : > { %1082 = vmatmul.msk.bf16.gmra.mxu0 %vm445_vm1, %v1119_v33  ;;  %1090 = vmatmul.msk.bf16.gmra.mxu1 %vm445_vm1, %v1127_v34 }
  0x91   : > { %1098 = vmatmul.msk.bf16.gmra.mxu2 %vm445_vm1, %v1135_v35  ;;  %1106 = vmatmul.msk.bf16.gmra.mxu3 %vm445_vm1, %v1143_v36 }
  0xa0   : > { %1083 = vmatmul.msk.bf16.gmra.mxu0 %vm445_vm1, %v1120_v37  ;;  %1091 = vmatmul.msk.bf16.gmra.mxu1 %vm445_vm1, %v1128_v38 }
  0xa1   : > { %1099 = vmatmul.msk.bf16.gmra.mxu2 %vm445_vm1, %v1136_v39  ;;  %1107 = vmatmul.msk.bf16.gmra.mxu3 %vm445_vm1, %v1144_v40 }
  0xad   : > { %v555_v41 = vpop.f32.mrf.mxu0  ;;  %v595_v42 = vpop.f32.mrf.mxu1 }
  0xae   : > { %v556_v48 = vadd.f32 %v1628_v43, %v555_v41  ;;  %v596_v49 = vadd.f32 %v1628_v43, %v595_v42 }
  0xb4   : > { %v635_v44 = vpop.f32.mrf.mxu2  ;;  %v675_v45 = vpop.f32.mrf.mxu3 }
  0xb5   : > { %v557_v46 = vpop.f32.mrf.mxu0  ;;  %v597_v47 = vpop.f32.mrf.mxu1  ;;  %v636_v56 = vadd.f32 %v1628_v43, %v635_v44  ;;  %v676_v57 = vadd.f32 %v1628_v43, %v675_v45 }
  0xb6   : > { %v558_v50 = vadd.f32 %v1628_v43, %v557_v46  ;;  %v598_v51 = vadd.f32 %v1628_v43, %v597_v47 }
  0xb8   : > { %v1154_v52 = vpack.c.bf16 %v558_v50, %v556_v48  ;;  %v1194_v53 = vpack.c.bf16 %v598_v51, %v596_v49 }
  0xba   : > { %1155 = vst [vmem:[%s1636_s27] sm:$0xff] %v1154_v52  }
  0xbb   : > { %1318 = vst [vmem:[%s1636_s27 + $0x40] sm:$0xff] %v1194_v53  }
  0xbc   : > { %v637_v54 = vpop.f32.mrf.mxu2  ;;  %v677_v55 = vpop.f32.mrf.mxu3 }
  0xbd   : > { %v638_v58 = vadd.f32 %v1628_v43, %v637_v54  ;;  %v678_v59 = vadd.f32 %v1628_v43, %v677_v55  ;;  %v560_v60 = vpop.f32.mrf.mxu0  ;;  %v600_v61 = vpop.f32.mrf.mxu1 }
  0xbe   : > { %v561_v4 = vadd.f32 %v1628_v43, %v560_v60  ;;  %v601_v5 = vadd.f32 %v1628_v43, %v600_v61 }
  0xbf   : > { %v1234_v62 = vpack.c.bf16 %v638_v58, %v636_v56  ;;  %v1274_v63 = vpack.c.bf16 %v678_v59, %v676_v57 }
  0xc1   : > { %1326 = vst [vmem:[%s1636_s27 + $0x80] sm:$0xff] %v1234_v62  }
  0xc2   : > { %1334 = vst [vmem:[%s1636_s27 + $0xc0] sm:$0xff] %v1274_v63  }
  0xc4   : > { %v640_v0 = vpop.f32.mrf.mxu2  ;;  %v680_v1 = vpop.f32.mrf.mxu3 }
  0xc5   : > { %v562_v2 = vpop.f32.mrf.mxu0  ;;  %v602_v3 = vpop.f32.mrf.mxu1  ;;  %v641_v12 = vadd.f32 %v1628_v43, %v640_v0  ;;  %v681_v13 = vadd.f32 %v1628_v43, %v680_v1 }
  0xc6   : > { %v563_v6 = vadd.f32 %v1628_v43, %v562_v2  ;;  %v603_v7 = vadd.f32 %v1628_v43, %v602_v3 }
  0xc8   : > { %v1159_v8 = vpack.c.bf16 %v563_v6, %v561_v4  ;;  %v1199_v9 = vpack.c.bf16 %v603_v7, %v601_v5 }
  0xca   : > { %1311 = vst [vmem:[%s1636_s27 + $0x8] sm:$0xff] %v1159_v8  }
  0xcb   : > { %1319 = vst [vmem:[%s1636_s27 + $0x48] sm:$0xff] %v1199_v9  }
  0xcc   : > { %v642_v10 = vpop.f32.mrf.mxu2  ;;  %v682_v11 = vpop.f32.mrf.mxu3 }
  0xcd   : > { %v643_v14 = vadd.f32 %v1628_v43, %v642_v10  ;;  %v683_v15 = vadd.f32 %v1628_v43, %v682_v11  ;;  %v565_v16 = vpop.f32.mrf.mxu0  ;;  %v605_v17 = vpop.f32.mrf.mxu1 }
  0xce   : > { %v566_v24 = vadd.f32 %v1628_v43, %v565_v16  ;;  %v606_v25 = vadd.f32 %v1628_v43, %v605_v17 }
  0xcf   : > { %v1239_v18 = vpack.c.bf16 %v643_v14, %v641_v12  ;;  %v1279_v19 = vpack.c.bf16 %v683_v15, %v681_v13 }
  0xd1   : > { %1327 = vst [vmem:[%s1636_s27 + $0x88] sm:$0xff] %v1239_v18  }
  0xd2   : > { %1335 = vst [vmem:[%s1636_s27 + $0xc8] sm:$0xff] %v1279_v19  }
  0xd4   : > { %v645_v20 = vpop.f32.mrf.mxu2  ;;  %v685_v21 = vpop.f32.mrf.mxu3 }
  0xd5   : > { %v567_v22 = vpop.f32.mrf.mxu0  ;;  %v607_v23 = vpop.f32.mrf.mxu1  ;;  %v646_v32 = vadd.f32 %v1628_v43, %v645_v20  ;;  %v686_v33 = vadd.f32 %v1628_v43, %v685_v21 }
  0xd6   : > { %v568_v26 = vadd.f32 %v1628_v43, %v567_v22  ;;  %v608_v27 = vadd.f32 %v1628_v43, %v607_v23 }
  0xd8   : > { %v1164_v28 = vpack.c.bf16 %v568_v26, %v566_v24  ;;  %v1204_v29 = vpack.c.bf16 %v608_v27, %v606_v25 }
  0xda   : > { %1312 = vst [vmem:[%s1636_s27 + $0x10] sm:$0xff] %v1164_v28  }
  0xdb   : > { %1320 = vst [vmem:[%s1636_s27 + $0x50] sm:$0xff] %v1204_v29  }
  0xdc   : > { %v647_v30 = vpop.f32.mrf.mxu2  ;;  %v687_v31 = vpop.f32.mrf.mxu3 }
  0xdd   : > { %v648_v34 = vadd.f32 %v1628_v43, %v647_v30  ;;  %v688_v35 = vadd.f32 %v1628_v43, %v687_v31  ;;  %v570_v36 = vpop.f32.mrf.mxu0  ;;  %v610_v37 = vpop.f32.mrf.mxu1 }
  0xde   : > { %v571_v45 = vadd.f32 %v1628_v43, %v570_v36  ;;  %v611_v46 = vadd.f32 %v1628_v43, %v610_v37 }
  0xdf   : > { %v1244_v38 = vpack.c.bf16 %v648_v34, %v646_v32  ;;  %v1284_v39 = vpack.c.bf16 %v688_v35, %v686_v33 }
  0xe1   : > { %1328 = vst [vmem:[%s1636_s27 + $0x90] sm:$0xff] %v1244_v38  }
  0xe2   : > { %1336 = vst [vmem:[%s1636_s27 + $0xd0] sm:$0xff] %v1284_v39  }
  0xe4   : > { %v650_v40 = vpop.f32.mrf.mxu2  ;;  %v690_v41 = vpop.f32.mrf.mxu3 }
  0xe5   : > { %v572_v42 = vpop.f32.mrf.mxu0  ;;  %v612_v44 = vpop.f32.mrf.mxu1  ;;  %v651_v53 = vadd.f32 %v1628_v43, %v650_v40  ;;  %v691_v54 = vadd.f32 %v1628_v43, %v690_v41 }
  0xe6   : > { %v573_v47 = vadd.f32 %v1628_v43, %v572_v42  ;;  %v613_v48 = vadd.f32 %v1628_v43, %v612_v44 }
  0xe8   : > { %v1169_v49 = vpack.c.bf16 %v573_v47, %v571_v45  ;;  %v1209_v50 = vpack.c.bf16 %v613_v48, %v611_v46 }
  0xea   : > { %1313 = vst [vmem:[%s1636_s27 + $0x18] sm:$0xff] %v1169_v49  }
  0xeb   : > { %1321 = vst [vmem:[%s1636_s27 + $0x58] sm:$0xff] %v1209_v50  }
  0xec   : > { %v652_v51 = vpop.f32.mrf.mxu2  ;;  %v692_v52 = vpop.f32.mrf.mxu3 }
  0xed   : > { %v653_v55 = vadd.f32 %v1628_v43, %v652_v51  ;;  %v693_v56 = vadd.f32 %v1628_v43, %v692_v52  ;;  %v575_v57 = vpop.f32.mrf.mxu0  ;;  %v615_v58 = vpop.f32.mrf.mxu1 }
  0xee   : > { %v576_v1 = vadd.f32 %v1628_v43, %v575_v57  ;;  %v616_v2 = vadd.f32 %v1628_v43, %v615_v58 }
  0xef   : > { %v1249_v59 = vpack.c.bf16 %v653_v55, %v651_v53  ;;  %v1289_v60 = vpack.c.bf16 %v693_v56, %v691_v54 }
  0xf1   : > { %1329 = vst [vmem:[%s1636_s27 + $0x98] sm:$0xff] %v1249_v59  }
  0xf2   : > { %1337 = vst [vmem:[%s1636_s27 + $0xd8] sm:$0xff] %v1289_v60  }
  0xf4   : > { %v655_v61 = vpop.f32.mrf.mxu2  ;;  %v695_v62 = vpop.f32.mrf.mxu3 }
  0xf5   : > { %v577_v63 = vpop.f32.mrf.mxu0  ;;  %v617_v0 = vpop.f32.mrf.mxu1  ;;  %v656_v9 = vadd.f32 %v1628_v43, %v655_v61  ;;  %v696_v10 = vadd.f32 %v1628_v43, %v695_v62 }
  0xf6   : > { %v578_v3 = vadd.f32 %v1628_v43, %v577_v63  ;;  %v618_v4 = vadd.f32 %v1628_v43, %v617_v0 }
  0xf8   : > { %v1174_v5 = vpack.c.bf16 %v578_v3, %v576_v1  ;;  %v1214_v6 = vpack.c.bf16 %v618_v4, %v616_v2 }
  0xfa   : > { %1314 = vst [vmem:[%s1636_s27 + $0x20] sm:$0xff] %v1174_v5  }
  0xfb   : > { %1322 = vst [vmem:[%s1636_s27 + $0x60] sm:$0xff] %v1214_v6  }
  0xfc   : > { %v657_v7 = vpop.f32.mrf.mxu2  ;;  %v697_v8 = vpop.f32.mrf.mxu3 }
  0xfd   : > { %v658_v11 = vadd.f32 %v1628_v43, %v657_v7  ;;  %v698_v12 = vadd.f32 %v1628_v43, %v697_v8  ;;  %v580_v13 = vpop.f32.mrf.mxu0  ;;  %v620_v14 = vpop.f32.mrf.mxu1 }
  0xfe   : > { %v581_v21 = vadd.f32 %v1628_v43, %v580_v13  ;;  %v621_v22 = vadd.f32 %v1628_v43, %v620_v14 }
  0xff   : > { %v1254_v15 = vpack.c.bf16 %v658_v11, %v656_v9  ;;  %v1294_v16 = vpack.c.bf16 %v698_v12, %v696_v10 }
 0x101   : > { %1330 = vst [vmem:[%s1636_s27 + $0xa0] sm:$0xff] %v1254_v15  }
 0x102   : > { %1338 = vst [vmem:[%s1636_s27 + $0xe0] sm:$0xff] %v1294_v16  }
 0x104   : > { %v660_v17 = vpop.f32.mrf.mxu2  ;;  %v700_v18 = vpop.f32.mrf.mxu3 }
 0x105   : > { %v582_v19 = vpop.f32.mrf.mxu0  ;;  %v622_v20 = vpop.f32.mrf.mxu1  ;;  %v661_v29 = vadd.f32 %v1628_v43, %v660_v17  ;;  %v701_v30 = vadd.f32 %v1628_v43, %v700_v18 }
 0x106   : > { %v583_v23 = vadd.f32 %v1628_v43, %v582_v19  ;;  %v623_v24 = vadd.f32 %v1628_v43, %v622_v20 }
 0x108   : > { %v1179_v25 = vpack.c.bf16 %v583_v23, %v581_v21  ;;  %v1219_v26 = vpack.c.bf16 %v623_v24, %v621_v22 }
 0x10a   : > { %1315 = vst [vmem:[%s1636_s27 + $0x28] sm:$0xff] %v1179_v25  }
 0x10b   : > { %1323 = vst [vmem:[%s1636_s27 + $0x68] sm:$0xff] %v1219_v26  }
 0x10c   : > { %v662_v27 = vpop.f32.mrf.mxu2  ;;  %v702_v28 = vpop.f32.mrf.mxu3 }
 0x10d   : > { %v663_v31 = vadd.f32 %v1628_v43, %v662_v27  ;;  %v703_v32 = vadd.f32 %v1628_v43, %v702_v28  ;;  %v585_v33 = vpop.f32.mrf.mxu0  ;;  %v625_v34 = vpop.f32.mrf.mxu1 }
 0x10e   : > { %v586_v41 = vadd.f32 %v1628_v43, %v585_v33  ;;  %v626_v42 = vadd.f32 %v1628_v43, %v625_v34 }
 0x10f   : > { %v1259_v35 = vpack.c.bf16 %v663_v31, %v661_v29  ;;  %v1299_v36 = vpack.c.bf16 %v703_v32, %v701_v30 }
 0x111   : > { %1331 = vst [vmem:[%s1636_s27 + $0xa8] sm:$0xff] %v1259_v35  }
 0x112   : > { %1339 = vst [vmem:[%s1636_s27 + $0xe8] sm:$0xff] %v1299_v36  }
 0x114   : > { %v665_v37 = vpop.f32.mrf.mxu2  ;;  %v705_v38 = vpop.f32.mrf.mxu3 }
 0x115   : > { %v587_v39 = vpop.f32.mrf.mxu0  ;;  %v627_v40 = vpop.f32.mrf.mxu1  ;;  %v666_v50 = vadd.f32 %v1628_v43, %v665_v37  ;;  %v706_v51 = vadd.f32 %v1628_v43, %v705_v38 }
 0x116   : > { %v588_v44 = vadd.f32 %v1628_v43, %v587_v39  ;;  %v628_v45 = vadd.f32 %v1628_v43, %v627_v40 }
 0x118   : > { %v1184_v46 = vpack.c.bf16 %v588_v44, %v586_v41  ;;  %v1224_v47 = vpack.c.bf16 %v628_v45, %v626_v42 }
 0x11a   : > { %1316 = vst [vmem:[%s1636_s27 + $0x30] sm:$0xff] %v1184_v46  }
 0x11b   : > { %1324 = vst [vmem:[%s1636_s27 + $0x70] sm:$0xff] %v1224_v47  }
 0x11c   : > { %v667_v48 = vpop.f32.mrf.mxu2  ;;  %v707_v49 = vpop.f32.mrf.mxu3 }
 0x11d   : > { %v668_v52 = vadd.f32 %v1628_v43, %v667_v48  ;;  %v708_v53 = vadd.f32 %v1628_v43, %v707_v49  ;;  %v590_v54 = vpop.f32.mrf.mxu0  ;;  %v630_v55 = vpop.f32.mrf.mxu1 }
 0x11e   : > { %v591_v62 = vadd.f32 %v1628_v43, %v590_v54  ;;  %v631_v63 = vadd.f32 %v1628_v43, %v630_v55 }
 0x11f   : > { %v1264_v56 = vpack.c.bf16 %v668_v52, %v666_v50  ;;  %v1304_v57 = vpack.c.bf16 %v708_v53, %v706_v51 }
 0x121   : > { %1332 = vst [vmem:[%s1636_s27 + $0xb0] sm:$0xff] %v1264_v56  }
 0x122   : > { %1340 = vst [vmem:[%s1636_s27 + $0xf0] sm:$0xff] %v1304_v57  }
 0x124   : > { %v670_v58 = vpop.f32.mrf.mxu2  ;;  %v710_v59 = vpop.f32.mrf.mxu3 }
 0x125   : > { %v592_v60 = vpop.f32.mrf.mxu0  ;;  %v632_v61 = vpop.f32.mrf.mxu1  ;;  %v671_v6 = vadd.f32 %v1628_v43, %v670_v58  ;;  %v711_v7 = vadd.f32 %v1628_v43, %v710_v59 }
 0x126   : > { %v593_v0 = vadd.f32 %v1628_v43, %v592_v60  ;;  %v633_v1 = vadd.f32 %v1628_v43, %v632_v61 }
 0x128   : > { %v1189_v2 = vpack.c.bf16 %v593_v0, %v591_v62  ;;  %v1229_v3 = vpack.c.bf16 %v633_v1, %v631_v63 }
 0x12a   : > { %1317 = vst [vmem:[%s1636_s27 + $0x38] sm:$0xff] %v1189_v2  }
 0x12b   : > { %1325 = vst [vmem:[%s1636_s27 + $0x78] sm:$0xff] %v1229_v3  }
 0x12c   : > { %v672_v4 = vpop.f32.mrf.mxu2  ;;  %v712_v5 = vpop.f32.mrf.mxu3 }
 0x12d   : > { %v673_v8 = vadd.f32 %v1628_v43, %v672_v4  ;;  %v713_v9 = vadd.f32 %v1628_v43, %v712_v5 }
 0x12f   : > { %v1269_v10 = vpack.c.bf16 %v673_v8, %v671_v6  ;;  %v1309_v11 = vpack.c.bf16 %v713_v9, %v711_v7 }
 0x131   : > { %1333 = vst [vmem:[%s1636_s27 + $0xb8] sm:$0xff] %v1269_v10  }
 0x132   : > { %1341 = vst [vmem:[%s1636_s27 + $0xf8] sm:$0xff] %v1309_v11  }
 0x133   : > { %1429 = shalt.err (!%p1426_p3)
}
 0x134   : > { %s1466_s20 = smov 64   ;;  %s1467_s24 = smov 4  }
 0x135   : > { %1360 = dma.vmem_to_hbm [thread:$0]  (%p1526_p5), %s857_s5, 4096, %s859_s6, %s844_s16, %s1466_s20, %s1466_s20, %s1467_s24  }
 0x136 PF: > { %p1366_p4 = scmp.ge.s32.totalorder %s1464_s15, 2  ;;  %s873_s25 = sand.u32 1, %s1452_s12  }
 0x137   : > { %s874_s26 = scalar_lea.sflag [#allocation3], %s873_s25 }
 0x138   : > { %p1363_p7 = pnand %p1366_p4, %p1530_p6 }
 0x13a   : > { %p1364_p8 = pneg %p1363_p7 }
 0x13c   : > { %1447 = dma.done.wait (%p1364_p8), %s874_s26, 4096  }
 0x13d   : > { %1449 = vsyncadd (%p1364_p8), %s874_s26, 4294963200  ;;  %p13_p9 = scmp.ge.s32.totalorder %s1513_s18, 4   ;;  %s1770_s12 = smov %s1456_s13 }
 0x13e   : > { %s1771_s13 = smov %s1460_s14  ;;  %s1772_s14 = smov %s1524_s21 }
 0x13f   : > { %s1773_s15 = smov %s1513_s18  ;;  %15 = sbr.rel (!%p13_p9) target bundleno = 3 (0x3), region = 67 }
 0x144   :  { %880 = vsyncpa [#allocation3], 1 }
 0x145   :  { %882 = vsyncpa [#allocation3 + $0x1], 1 }

</bundles_post_ra>
